<compile_context>
chip_gen: v7x
topology: tpu7x:2x2x1
jax: 0.10.0
libtpu: 0.0.40
codegen_flags: <defaults>
</compile_context>

<pallas_src>
import functools

import jax
import jax.numpy as jnp
import numpy as np
from jax.experimental import pallas as pl
from jax.experimental.pallas import tpu as pltpu


# ----------------------------------------------------------------------------
# pltpu.roll sign-convention probe (primed once, outside any trace)
# ----------------------------------------------------------------------------
_ROLL_IS_JNP_CONVENTION = None


def _roll_matches_jnp():
    """True if pltpu.roll follows jnp.roll semantics (out[i] = x[i - shift]).

    Probed once with a tiny kernel.  Must be primed outside of any jit/kernel trace
    (__main__ does this) so the conv tap shifts are always correct.
    """
    global _ROLL_IS_JNP_CONVENTION
    if _ROLL_IS_JNP_CONVENTION is None:
        def k(x_ref, o_ref):
            o_ref[...] = pltpu.roll(x_ref[...], 1, axis=1)

        x = jnp.arange(8 * 128, dtype=jnp.int32).reshape(8, 128)
        y = pl.pallas_call(k, out_shape=jax.ShapeDtypeStruct((8, 128), jnp.int32))(x)
        _ROLL_IS_JNP_CONVENTION = bool(int(y[0, 1]) == int(x[0, 0]))
    return _ROLL_IS_JNP_CONVENTION


# ----------------------------------------------------------------------------
# In-kernel same-padding conv: roll+mask im2col into VMEM scratch + one MXU matmul
# ----------------------------------------------------------------------------
def _make_tap_masks(H, W, K):
    """Per-tap validity masks (shared by every conv in the kernel body)."""
    HW = H * W
    lane = jax.lax.broadcasted_iota(jnp.int32, (1, HW), 1)
    yy, xx = lane // W, lane % W
    pad = (K - 1) // 2
    masks = {}
    for ky in range(K):
        for kx in range(K):
            dy, dx = ky - pad, kx - pad
            conds = []
            if dy < 0:
                conds.append(yy >= -dy)
            elif dy > 0:
                conds.append(yy < H - dy)
            if dx < 0:
                conds.append(xx >= -dx)
            elif dx > 0:
                conds.append(xx < W - dx)
            masks[(dy, dx)] = (functools.reduce(lambda u, v: u & v, conds)
                               if conds else None)
    return masks


def _conv_same_flat(a, w_bf, b_f32, patch_ref, *, W, K, masks):
    """KxK same-padding conv on a channels-first flat image.

    a:         (Cin, H*W) f32 activation, spatial flattened row-major (p = y*W + x)
    w_bf:      (Cout, K*K*Cin) bf16 weight, rows ordered ((ky*K + kx)*Cin + ci)
    b_f32:     (Cout, 1) f32 bias
    patch_ref: (K*K*Cin, H*W) f32 VMEM scratch (im2col buffer)
    returns    (Cout, H*W) f32
    """
    Cin, HW = a.shape
    pad = (K - 1) // 2
    jnp_conv = _roll_matches_jnp()
    t = 0
    for ky in range(K):
        for kx in range(K):
            dy, dx = ky - pad, kx - pad
            delta = dy * W + dx
            if delta == 0:
                piece = a
            else:
                shift = ((-delta) if jnp_conv else delta) % HW
                piece = pltpu.roll(a, shift, axis=1)
            mask = masks[(dy, dx)]
            if mask is not None:
                piece = jnp.where(mask, piece, 0.0)
            patch_ref[t * Cin:(t + 1) * Cin, :] = piece
            t += 1
    patches = patch_ref[...].astype(jnp.bfloat16)                        # (K*K*Cin, HW)
    out = jnp.dot(w_bf, patches, preferred_element_type=jnp.float32)     # (Cout, HW) f32
    return out + b_f32


# ----------------------------------------------------------------------------
# Fused whole-decoder kernel (grid = (B, T); state held in VMEM scratch across T)
# ----------------------------------------------------------------------------
def _make_decoder_kernel(*, L, K, H, W, hid, n_out, n_reset):
    def kernel(*refs):
        it = iter(refs)
        take = lambda n: [next(it) for _ in range(n)]

        # ---- inputs (order must match in_specs in decoder_forward) ----
        x_ref = next(it)                       # (1, 1, Cin, HW)
        hc0 = take(2 * L)                      # h0_0, c0_0, h0_1, c0_1, ... (1, hid, HW)
        m0_ref = next(it)                      # (1, hid, HW)
        layer_w = [take(9) for _ in range(L)]  # wx,bx,wh,bh,wm,bm,w11,wd,bd per layer
        mu_w = [take(2) for _ in range(L - 1)]
        out_w = [take(2) for _ in range(n_out)]
        reset_w = [take(2) for _ in range(n_reset)]
        # ---- output ----
        o_ref = next(it)                       # (1, 1, out_ch, HW)
        # ---- scratch ----
        hc_scr = take(2 * L)                   # persistent h/c per layer, (hid, HW) f32
        m_scr = next(it)                       # persistent M, (hid, HW) f32
        patches = list(it)                     # one exact-size im2col buffer per fused conv

        t_id = pl.program_id(1)

        # Initialize the recurrent VMEM state from the provided initial states at t == 0
        # of every batch element (grid order is b-major, t-minor).
        @pl.when(t_id == 0)
        def _():
            for l in range(L):
                hc_scr[2 * l][...] = hc0[2 * l][0]
                hc_scr[2 * l + 1][...] = hc0[2 * l + 1][0]
            m_scr[...] = m0_ref[0]

        masks = _make_tap_masks(H, W, K)
        pit = iter(patches)

        def conv(a, w_ref, b_ref):
            return _conv_same_flat(a, w_ref[...], b_ref[...], next(pit),
                                   W=W, K=K, masks=masks)

        def row(a, i):                         # sublane (row) slice, no lane work
            return a[i * hid:(i + 1) * hid, :]

        inp = x_ref[0, 0]                      # (Cin, HW) f32
        m = m_scr[...]                         # (hid, HW) f32
        for l in range(L):
            wx, bx, wh, bh, wm, bm, w11, wd, bd = layer_w[l]
            h_prev = hc_scr[2 * l][...]
            c_prev = hc_scr[2 * l + 1][...]

            xh = conv(inp, wx, bx)             # (7*hid, HW) f32
            hh = conv(h_prev, wh, bh)          # (4*hid, HW) f32
            mh = conv(m, wm, bm)               # (3*hid, HW) f32

            g   = jnp.tanh(row(xh, 0) + row(hh, 0))
            i_g = jax.nn.sigmoid(row(xh, 1) + row(hh, 1))
            f_g = jax.nn.sigmoid(row(xh, 2) + row(hh, 2))
            c_new = f_g * c_prev + i_g * g

            g_p = jnp.tanh(row(xh, 3) + row(mh, 0))
            i_p = jax.nn.sigmoid(row(xh, 4) + row(mh, 1))
            f_p = jax.nn.sigmoid(row(xh, 5) + row(mh, 2))
            m_new = f_p * m + i_p * g_p

            # Four (hid, hid) 1x1 convs merged into one (2*hid, 2*hid) matmul:
            #   w11 = [[wco, wmo], [w11c, w11m]] acting on [c_new; m_new]
            cm = jnp.concatenate([c_new, m_new], axis=0).astype(jnp.bfloat16)
            mix = jnp.dot(w11[...], cm, preferred_element_type=jnp.float32)

            o_g = jax.nn.sigmoid(row(xh, 6) + row(hh, 3) + mix[:hid, :])
            h_new = o_g * jnp.tanh(mix[hid:, :])

            hc_scr[2 * l][...] = h_new         # carried to the next timestep
            hc_scr[2 * l + 1][...] = c_new

            # Following DeConv2D (stride-1 transposed conv == conv with flipped kernel;
            # the flip is folded into the weight at parameter-prep time).
            inp = conv(h_new, wd, bd)
            if l < L - 1:
                m = conv(m_new, mu_w[l][0], mu_w[l][1])   # fused m_upsample
            else:
                m = m_new

        out = inp
        for w_ref, b_ref in out_w:                         # fused output conv chain
            out = conv(out, w_ref, b_ref)
        o_ref[0, 0] = out.astype(o_ref.dtype)

        # cell_reset_m between timesteps (skipped after the last one, as in the original).
        @pl.when(t_id != pl.num_programs(1) - 1)
        def _():
            mm = m
            for w_ref, b_ref in reset_w:
                mm = conv(mm, w_ref, b_ref)
            m_scr[...] = mm

    return kernel


# ----------------------------------------------------------------------------
# Decoder_ST_ConvLSTM forward: ONE pallas_call for the whole sequence
# ----------------------------------------------------------------------------
def decoder_forward(params, x_seq, states, M0, H, W):
    """x_seq: (B,T,Cin,H*W) f32; states: list of (h,c) per layer (encoder order), each
    (B,hid,H*W) f32; M0: (B,hid,H*W) f32.  Returns (B,T,Cout,H*W) f32."""
    B, T, Cin, HW = x_seq.shape
    assert HW == H * W
    hid = M0.shape[1]
    L = len(params['rnn'])
    K = int(round((params['rnn'][0]['wh'].shape[1] // hid) ** 0.5))
    out_ch = params['out'][-1]['w'].shape[0]
    n_out = len(params['out'])
    n_reset = len(params['reset_m'])

    # ---- flat argument list (kernel unpacks in the same order) ----
    state_arrays = []
    for (h0, c0) in list(states)[::-1]:            # states.reverse() from the PyTorch forward
        state_arrays += [h0, c0]

    weight_arrays = []
    for l in range(L):
        rp, dp = params['rnn'][l], params['deconv'][l]
        weight_arrays += [rp['wx'], rp['bx'], rp['wh'], rp['bh'], rp['wm'], rp['bm'],
                          rp['w11'], dp['w'], dp['b']]
    for mp in params['m_up']:
        weight_arrays += [mp['w'], mp['b']]
    for oc in params['out']:
        weight_arrays += [oc['w'], oc['b']]
    for rc in params['reset_m']:
        weight_arrays += [rc['w'], rc['b']]

    # ---- block specs ----
    def seq_spec(C):
        return pl.BlockSpec((1, 1, C, HW), lambda b, t: (b, t, 0, 0))

    def state_spec():
        return pl.BlockSpec((1, hid, HW), lambda b, t: (b, 0, 0))

    def rep_spec(a):                               # weights: fetched once, reused for all (b,t)
        return pl.BlockSpec(a.shape, lambda b, t: (0,) * a.ndim)

    in_specs = ([seq_spec(Cin)]
                + [state_spec() for _ in range(2 * L + 1)]
                + [rep_spec(a) for a in weight_arrays])

    # ---- scratch: recurrent state + one exact-size im2col buffer per fused conv ----
    scratch = [pltpu.VMEM((hid, HW), jnp.float32) for _ in range(2 * L + 1)]
    patch_rows = []
    for l in range(L):
        patch_rows += [params['rnn'][l]['wx'].shape[1], params['rnn'][l]['wh'].shape[1],
                       params['rnn'][l]['wm'].shape[1], params['deconv'][l]['w'].shape[1]]
        if l < L - 1:
            patch_rows.append(params['m_up'][l]['w'].shape[1])
    patch_rows += [oc['w'].shape[1] for oc in params['out']]
    patch_rows += [rc['w'].shape[1] for rc in params['reset_m']]
    scratch += [pltpu.VMEM((r, HW), jnp.float32) for r in patch_rows]

    kernel = _make_decoder_kernel(L=L, K=K, H=H, W=W, hid=hid,
                                  n_out=n_out, n_reset=n_reset)

    return pl.pallas_call(
        kernel,
        out_shape=jax.ShapeDtypeStruct((B, T, out_ch, HW), x_seq.dtype),
        grid=(B, T),
        in_specs=in_specs,
        out_specs=seq_spec(out_ch),
        scratch_shapes=scratch,
        compiler_params=pltpu.CompilerParams(
            dimension_semantics=("parallel", "arbitrary")),
    )(x_seq, *state_arrays, M0, *weight_arrays)


# ----------------------------------------------------------------------------
# Pure-JAX reference (mirrors the kernel's bf16-operand / f32-accumulate matmuls)
# ----------------------------------------------------------------------------
def _conv_ref(x, w_bf, b, K):
    """x: (B,C,H,W) f32.  Same math as the kernel conv: bf16 inputs/weights, f32 accumulate."""
    cout = w_bf.shape[0]
    cin = w_bf.shape[1] // (K * K)
    w = w_bf.astype(jnp.float32).reshape(cout, K, K, cin).transpose(0, 3, 1, 2)   # OIHW
    xb = x.astype(jnp.bfloat16).astype(jnp.float32)
    y = jax.lax.conv_general_dilated(
        xb, w, window_strides=(1, 1), padding='SAME',
        dimension_numbers=('NCHW', 'OIHW', 'NCHW'),
        precision=jax.lax.Precision.HIGHEST)
    return y + b.reshape(1, cout, 1, 1)


def decoder_forward_ref(params, x_seq_img, states, M, H, W):
    """Reference on (B,T,C,H,W) images; mirrors the original PyTorch control flow."""
    states = [(h.reshape(h.shape[0], -1, H, W), c.reshape(c.shape[0], -1, H, W))
              for (h, c) in states][::-1]
    M = M.reshape(M.shape[0], -1, H, W)
    hid = M.shape[1]
    L = len(params['rnn'])
    K = int(round((params['rnn'][0]['wh'].shape[1] // hid) ** 0.5))
    T = x_seq_img.shape[1]
    outs = []
    for t in range(T):
        inp = x_seq_img[:, t]
        new_states = []
        for l in range(L):
            rp, dp = params['rnn'][l], params['deconv'][l]
            h, c = states[l]
            xh = _conv_ref(inp, rp['wx'], rp['bx'], K)
            hh = _conv_ref(h, rp['wh'], rp['bh'], K)
            mh = _conv_ref(M, rp['wm'], rp['bm'], K)
            row = lambda a, i: a[:, i * hid:(i + 1) * hid]
            g   = jnp.tanh(row(xh, 0) + row(hh, 0))
            i_g = jax.nn.sigmoid(row(xh, 1) + row(hh, 1))
            f_g = jax.nn.sigmoid(row(xh, 2) + row(hh, 2))
            c_new = f_g * c + i_g * g
            g_p = jnp.tanh(row(xh, 3) + row(mh, 0))
            i_p = jax.nn.sigmoid(row(xh, 4) + row(mh, 1))
            f_p = jax.nn.sigmoid(row(xh, 5) + row(mh, 2))
            m_new = f_p * M + i_p * g_p
            cm = jnp.concatenate([c_new, m_new], axis=1)
            cm = cm.astype(jnp.bfloat16).astype(jnp.float32)
            mix = jnp.einsum('oc,bchw->bohw', rp['w11'].astype(jnp.float32), cm,
                             precision=jax.lax.Precision.HIGHEST)
            o_g = jax.nn.sigmoid(row(xh, 6) + row(hh, 3) + mix[:, :hid])
            h_new = o_g * jnp.tanh(mix[:, hid:])
            new_states.append((h_new, c_new))
            inp = _conv_ref(h_new, dp['w'], dp['b'], K)
            M = m_new
            if l < L - 1:
                M = _conv_ref(M, params['m_up'][l]['w'], params['m_up'][l]['b'], K)
        out = inp
        for oc in params['out']:
            out = _conv_ref(out, oc['w'], oc['b'], K)
        states = new_states
        outs.append(out)
        if t != T - 1:
            for rc in params['reset_m']:
                M = _conv_ref(M, rc['w'], rc['b'], K)
    return jnp.stack(outs, 1)


# ----------------------------------------------------------------------------
# Deterministic synthetic parameter initialization (kernel-ready layouts)
# ----------------------------------------------------------------------------
def init_params(key, layer_num, in_ch, hid, out_ch, k=3):
    keys = jax.random.split(key, 256)
    it = iter(keys)

    def w(shape, scale=0.1):
        return scale * jax.random.normal(next(it), shape, jnp.float32)

    def conv_p(cin, cout):
        # weight stored as (Cout, K*K*Cin) bf16, tap-major rows (matches the kernel's im2col)
        wt = w((cout, k, k, cin)).reshape(cout, k * k * cin)
        return dict(w=wt.astype(jnp.bfloat16), b=w((cout, 1), 0.01))

    def deconv_p(cin, cout):
        # DeConv2D kept in ConvTranspose2d layout (Cin,Cout,KH,KW); a stride-1 transposed conv
        # with padding=(K-1)//2 equals a same-padding conv with the spatially flipped kernel.
        wt = w((cin, cout, k, k))
        w_eq = jnp.flip(wt, axis=(2, 3)).transpose(1, 2, 3, 0).reshape(cout, k * k * cin)
        return dict(w=w_eq.astype(jnp.bfloat16), b=w((cout, 1), 0.01))

    rnn, deconv = [], []
    cin = in_ch
    for _ in range(layer_num):
        px, ph, pm = conv_p(cin, 7 * hid), conv_p(hid, 4 * hid), conv_p(hid, 3 * hid)
        wco, wmo, w11c, w11m = (w((hid, hid)) for _ in range(4))
        w11 = jnp.concatenate(
            [jnp.concatenate([wco, wmo], axis=1),
             jnp.concatenate([w11c, w11m], axis=1)], axis=0).astype(jnp.bfloat16)
        rnn.append(dict(wx=px['w'], bx=px['b'], wh=ph['w'], bh=ph['b'],
                        wm=pm['w'], bm=pm['b'], w11=w11))
        deconv.append(deconv_p(hid, hid))
        cin = hid
    m_up = [deconv_p(hid, hid) for _ in range(layer_num - 1)]
    reset_m = [conv_p(hid, hid) for _ in range(layer_num - 1)]
    out_cells = [conv_p(hid, out_ch)]
    return dict(rnn=rnn, deconv=deconv, m_up=m_up, reset_m=reset_m, out=out_cells)


if __name__ == "__main__":
    B, T, Cin, H, W = 2, 3, 4, 16, 16
    hid = 16
    layer_num = 2
    HW = H * W

    # Prime the pltpu.roll convention probe outside of any trace (runs one tiny kernel).
    _roll_matches_jnp()

    root = jax.random.PRNGKey(0)
    k_par, k_x, k_s, k_m = jax.random.split(root, 4)

    params = init_params(k_par, layer_num, Cin, hid, Cin)

    # PyTorch-convention inputs (B,T,C,H,W); spatial flattened row-major for the kernel.
    x_img = jax.random.normal(k_x, (B, T, Cin, H, W), jnp.float32)
    x = x_img.reshape(B, T, Cin, HW)

    skeys = jax.random.split(k_s, 2 * layer_num)
    states = [
        (0.1 * jax.random.normal(skeys[2 * l], (B, hid, HW), jnp.float32),
         0.1 * jax.random.normal(skeys[2 * l + 1], (B, hid, HW), jnp.float32))
        for l in range(layer_num)
    ]
    M0 = 0.1 * jax.random.normal(k_m, (B, hid, HW), jnp.float32)

    # ---- fused Pallas decoder: one pallas_call for the whole sequence ----
    fwd = jax.jit(decoder_forward, static_argnums=(4, 5))
    out_flat = fwd(params, x, states, M0, H, W)               # (B, T, Cout, H*W)
    jax.block_until_ready(out_flat)
    out = out_flat.reshape(B, T, Cin, H, W)                   # back to (B, T, C, H, W)

    # ---- self-check against a pure-JAX reference that mirrors the bf16/f32 matmul math ----
    ref = jax.jit(decoder_forward_ref, static_argnums=(4, 5))(params, x_img, states, M0, H, W)
    np.testing.assert_allclose(np.asarray(out), np.asarray(ref), atol=3e-2, rtol=0)

    assert out.shape == (B, T, Cin, H, W), out.shape
    assert bool(jnp.all(jnp.isfinite(out)))
    print("KERNEL_OK")
</pallas_src>

<mosaic_0001>
module attributes {stable_mosaic.version = 11 : i64} {
  func.func @k(%arg0: memref<8x128xi32, #tpu.memory_space<vmem>>, %arg1: memref<8x128xi32, #tpu.memory_space<vmem>>) attributes {dimension_semantics = [], scalar_prefetch = 0 : i64, scratch_operands = 0 : i64, tpu.core_type = #tpu.core_type<tc>} {
    %c0 = arith.constant 0 : index
    %c0_0 = arith.constant 0 : index
    %0 = vector.load %arg0[%c0, %c0_0] : memref<8x128xi32, #tpu.memory_space<vmem>>, vector<8x128xi32>
    %c1_i32 = arith.constant 1 : i32
    %1 = tpu.dynamic_rotate %0 by %c1_i32 dim 1 : vector<8x128xi32>, i32 -> vector<8x128xi32>
    %c0_1 = arith.constant 0 : index
    %c0_2 = arith.constant 0 : index
    %2 = vector.load %arg1[%c0_1, %c0_2] : memref<8x128xi32, #tpu.memory_space<vmem>>, vector<8x128xi32>
    tpu.vector_store %arg1[%c0_1, %c0_2], %1 {strides = array<i32>} : memref<8x128xi32, #tpu.memory_space<vmem>>, vector<8x128xi32>,
    return
  }
}

</mosaic_0001>

<bundles_post_ra>
// kernel: tpu_custom_call.1
= control target key start
LH: loop header
LB: loop body
LE: loop exit
PB: predicated region body
PF: predicated region fallthrough
CT: control target
= control target key end

     0   :  { %6 = vsyncpa [#allocation3], 0  ;;  %s128_s0 = inlined_call_operand.hbm [shape: s32[8,128], index: 0, kind: input, shape index: {}]   ;;  %s129_s1 = inlined_call_operand.hbm [shape: s32[8,128], index: 1, kind: output, shape index: {}]  }
   0x1   :  { %7 = vsyncpa [#allocation4], 0  ;;  %s91_s6 = smov [#allocation2]   ;;  %s43_s10 = scalar_lea.hbm %s128_s0, 128 }
   0x2   :  { %s14_s7 = sshll.u32 %s91_s6, 4  ;;  %p44_p0 = scmp.ne.s32.totalorder %s128_s0, %s43_s10  ;;  %s15_s7 = int_to_ptr.vmem [resolvable:$true] %s14_s7 }
   0x3   :  { %p47_p1 = scmp.lt.u32.totalorder %s43_s10, %s128_s0 }
   0x5   :  { %p49_p2 = pnand %p47_p1, %p44_p0 }
   0x7   :  { %52 = shalt.err (!%p49_p2)
}
   0x8   :  { %s53_s15 = scalar_lea.vmem %s15_s7, 128  ;;  %p58_p4 = scmp.lt.s32.totalorder %s15_s7, %s15_s7 }
   0x9   :  { %p54_p3 = scmp.ne.s32.totalorder %s15_s7, %s53_s15  ;;  %p59_p5 = scmp.lt.s32.totalorder %s53_s15, %s53_s15 }
   0xb   :  { %p60_p6 = por %p59_p5, %p58_p4 }
   0xd   :  { %p61_p7 = pnand %p60_p6, %p54_p3 }
   0xf   :  { %64 = shalt.err (!%p61_p7)
}
  0x10   :  { %17 = dma.hbm_to_vmem [thread:$0]  %s128_s0, 128, %s15_s7, [#allocation3]  }
  0x11   :  { %87 = dma.done.wait [#allocation3], 128  }
  0x12   :  { %88 = vsyncadd [#allocation3], 4294967168  ;;  %v21_v0 = vld [vmem:[#allocation2] sm:$0xff]  ;;  %s92_s18 = smov 1   ;;  %s93_s19 = smov [#allocation5]  }
  0x13   :  { %22 = vrot.lane.b32.xlu0 %v21_v0, %s92_s18  ;;  %s31_s20 = sshll.u32 %s93_s19, 4  ;;  %s32_s20 = int_to_ptr.vmem [resolvable:$true] %s31_s20 }
  0x14   :  { %s65_s21 = scalar_lea.vmem %s32_s20, 128  ;;  %p70_p9 = scmp.lt.s32.totalorder %s32_s20, %s32_s20 }
  0x15   :  { %p66_p8 = scmp.ne.s32.totalorder %s32_s20, %s65_s21  ;;  %p71_p10 = scmp.lt.s32.totalorder %s65_s21, %s65_s21 }
  0x17   :  { %p72_p11 = por %p71_p10, %p70_p9 }
  0x19   :  { %p73_p12 = pnand %p72_p11, %p66_p8 }
  0x85   :  { %v23_v1 = vpop.permute.xlu0 %22 }
  0x86   :  { %24 = vst [vmem:[#allocation5] sm:$0xff] %v23_v1 }
  0x87   :  { %76 = shalt.err (!%p73_p12)
}
  0x88   :  { %s77_s0 = scalar_lea.hbm %s129_s1, 128 }
  0x89   :  { %p78_p13 = scmp.ne.s32.totalorder %s129_s1, %s77_s0  ;;  %p81_p0 = scmp.lt.u32.totalorder %s77_s0, %s129_s1 }
  0x8b   :  { %p83_p1 = pnand %p81_p0, %p78_p13 }
  0x8d   :  { %86 = shalt.err (!%p83_p1)
}
  0x8e   :  { %34 = dma.vmem_to_hbm [thread:$0]  %s32_s20, 128, %s129_s1, [#allocation4]  }
  0x8f   :  { %89 = dma.done.wait [#allocation4], 128  }
  0x90   :  { %90 = vsyncadd [#allocation4], 4294967168 }
  0x91   :  { %38 = vsyncpa [#allocation3], 1 }
  0x92   :  { %39 = vsyncpa [#allocation4], 1 }

</bundles_post_ra>
